<compile_context>
chip_gen: v5e
topology: v5e:2x2
jax: 0.10.0
libtpu: 0.0.40
codegen_flags: <defaults>
</compile_context>

<pallas_src>
import functools

import jax
import jax.numpy as jnp
import numpy as np
from jax.experimental import pallas as pl
from jax.experimental.pallas import tpu as pltpu


def _round_up(x: int, m: int) -> int:
    return ((x + m - 1) // m) * m


def _vmem_budget_bytes() -> int:
    """Generation-aware VMEM budget for the double-buffered working set."""
    try:
        phys = pltpu.get_tpu_info().vmem_capacity_bytes
    except Exception:  # off-TPU / API unavailable: assume v7x's 64 MiB per TC
        phys = 64 * 1024 * 1024
    # Stay inside the scoped-VMEM default on every generation (16 MiB v5e,
    # 32 MiB v6e/v7x) so we never have to raise vmem_limit_bytes.
    return min(phys // 4, 14 * 1024 * 1024)


def _shrink_to_budget(tm, tn, tk, in_itemsize, budget_bytes):
    """Shrink tiles (alignment-preserving) until the pipelined footprint fits."""

    def footprint(tm_, tn_, tk_):
        # double-buffered A & B input tiles + double-buffered f32 output tile
        return 2 * in_itemsize * (tm_ * tk_ + tk_ * tn_) + 2 * 4 * tm_ * tn_

    while footprint(tm, tn, tk) > budget_bytes and tk > 128:
        tk = max(128, (tk // 2) // 128 * 128)
    while footprint(tm, tn, tk) > budget_bytes and tn > 128:
        tn = max(128, (tn // 2) // 128 * 128)
    while footprint(tm, tn, tk) > budget_bytes and tm > 8:
        tm = max(8, (tm // 2) // 8 * 8)
    return tm, tn, tk


def _make_quant_matmul_kernel(K, tk, mask_k, precision):
    """One (tm, tn) output tile, accumulated in-place over the K grid axis."""

    def kernel(scale_ref, a_ref, b_ref, out_ref):
        k = pl.program_id(3)

        @pl.when(k == 0)
        def _():
            out_ref[...] = jnp.zeros_like(out_ref)

        a = a_ref[...]
        b = b_ref[...]
        if mask_k:
            # Only emitted when K % tk != 0: zero the K-tail of the ragged
            # last block so stale/garbage padding never reaches the MXU.
            limit = K - k * tk  # >= tk on all but the last K step
            ki = jax.lax.broadcasted_iota(jnp.int32, (1, tk), 1)
            kj = jax.lax.broadcasted_iota(jnp.int32, (tk, 1), 0)
            a = jnp.where(ki < limit, a, 0.0)
            b = jnp.where(kj < limit, b, 0.0)

        # Pure MXU work on the hot path; scaling folded into the epilogue.
        out_ref[...] += jnp.dot(
            a, b, preferred_element_type=jnp.float32, precision=precision
        )

        @pl.when(k == pl.num_programs(3) - 1)
        def _():
            out_ref[...] = out_ref[...] * scale_ref[0, 0]

    return kernel


def quant_matmul(
    A,
    pre_act_scaling_factor_A,
    B,
    pre_act_scaling_factor_B,
    *,
    tm=512,
    tn=512,
    tk=1024,
    input_dtype=None,  # e.g. jnp.bfloat16 to halve HBM traffic (looser accuracy)
    precision=jax.lax.Precision.HIGHEST,  # deliberate: faithful f32; use DEFAULT for speed
):
    """Pallas implementation of QuantMatMul.forward.

    A: (bat, M, K), B: (bat, K, N), scaling factors: scalar / (1,).
    Returns (out (bat, M, N) f32, act_scaling_factor (1,) f32).
    """
    compute_dtype = jnp.dtype(input_dtype) if input_dtype is not None else jnp.float32
    A = jnp.asarray(A).astype(compute_dtype)
    B = jnp.asarray(B).astype(compute_dtype)
    bat, M, K = A.shape
    bat2, K2, N = B.shape
    assert bat == bat2 and K == K2, "A is (b, M, K); B must be (b, K, N)"

    sfa = jnp.asarray(pre_act_scaling_factor_A, jnp.float32).reshape(())
    sfb = jnp.asarray(pre_act_scaling_factor_B, jnp.float32).reshape(())
    act_sf = sfa * sfb
    # Combined epilogue scale: (1/sfA) * (1/sfB) * (sfA*sfB) (~= 1.0, kept so
    # the kernel stays faithful to the module's dequant/rescale structure).
    epi_scale = jnp.reshape((act_sf / sfa) / sfb, (1, 1))

    # Tile sizes: clamp to (8,128)-aligned problem dims, then fit VMEM budget.
    tm = min(tm, _round_up(M, 8))     # sublane dim of A / out
    tn = min(tn, _round_up(N, 128))   # lane dim of B / out
    tk = min(tk, _round_up(K, 128))   # lane dim of A, sublane dim of B
    tm, tn, tk = _shrink_to_budget(
        tm, tn, tk, jnp.dtype(compute_dtype).itemsize, _vmem_budget_bytes()
    )

    # No padding: ragged M/N edge blocks are masked by Pallas (their garbage
    # only produces output rows/cols that are never written back); the ragged
    # K tail is zero-masked inside the kernel.
    grid = (bat, pl.cdiv(M, tm), pl.cdiv(N, tn), pl.cdiv(K, tk))
    mask_k = (K % tk) != 0
    # NOTE(v7x megacore): bat * cdiv(M,tm) * cdiv(N,tn) should be >= 2 so the
    # "parallel" axes can actually shard across the two TensorCores; for tiny
    # single-tile shapes prefer growing tk rather than tm/tn.

    kernel = _make_quant_matmul_kernel(K, tk, mask_k, precision)

    out = pl.pallas_call(
        kernel,
        out_shape=jax.ShapeDtypeStruct((bat, M, N), jnp.float32),
        grid_spec=pltpu.PrefetchScalarGridSpec(
            num_scalar_prefetch=0,
            grid=grid,
            in_specs=[
                # scalar epilogue scale in SMEM (no per-step DMA traffic)
                pl.BlockSpec(memory_space=pltpu.MemorySpace.SMEM),
                # A tile (tm, tk)
                pl.BlockSpec((None, tm, tk), lambda b, i, j, k: (b, i, k)),
                # B tile (tk, tn)
                pl.BlockSpec((None, tk, tn), lambda b, i, j, k: (b, k, j)),
            ],
            # Output block index constant across K -> resident accumulator.
            out_specs=pl.BlockSpec((None, tm, tn), lambda b, i, j, k: (b, i, j)),
        ),
        compiler_params=pltpu.CompilerParams(
            # batch / M / N independent -> megacore-shardable; K is a reduction.
            dimension_semantics=("parallel", "parallel", "parallel", "arbitrary"),
        ),
    )(epi_scale, A, B)

    return out, jnp.reshape(act_sf, (1,))


if __name__ == "__main__":
    key = jax.random.PRNGKey(0)
    k1, k2, k3, k4 = jax.random.split(key, 4)

    sfA = jnp.array([0.05], dtype=jnp.float32)
    sfB = jnp.array([0.02], dtype=jnp.float32)
    sfa = float(sfA[0])
    sfb = float(sfB[0])

    # Small attention-style shapes: batch=2, seq=8, hidden=32.
    bat, M, K, N = 2, 8, 32, 8
    A = jax.random.normal(k1, (bat, M, K), dtype=jnp.float32)
    B = jax.random.normal(k2, (bat, K, N), dtype=jnp.float32)

    out, act_sf = quant_matmul(A, sfA, B, sfB)
    out = jax.block_until_ready(out)
    act_sf = jax.block_until_ready(act_sf)

    # float64 host reference mirroring the PyTorch math exactly.
    A64 = np.asarray(A, np.float64)
    B64 = np.asarray(B, np.float64)
    ref = ((A64 / sfa) @ (B64 / sfb)) * (sfa * sfb)
    assert out.shape == (bat, M, N)
    assert act_sf.shape == (1,)
    assert np.allclose(np.asarray(out, np.float64), ref, rtol=1e-4, atol=1e-4)
    assert np.allclose(np.asarray(act_sf), np.asarray(sfA) * np.asarray(sfB),
                       rtol=1e-6, atol=1e-6)

    # Ragged shapes exercising the masked-K tail and ragged M/N edge blocks.
    bat2, M2, K2, N2 = 2, 40, 200, 72
    A2 = jax.random.normal(k3, (bat2, M2, K2), dtype=jnp.float32)
    B2 = jax.random.normal(k4, (bat2, K2, N2), dtype=jnp.float32)
    out2, act_sf2 = quant_matmul(A2, sfA, B2, sfB)
    out2 = jax.block_until_ready(out2)
    ref2 = ((np.asarray(A2, np.float64) / sfa) @ (np.asarray(B2, np.float64) / sfb)) * (sfa * sfb)
    assert out2.shape == (bat2, M2, N2)
    assert np.allclose(np.asarray(out2, np.float64), ref2, rtol=1e-4, atol=1e-4)
    assert np.allclose(np.asarray(act_sf2), np.asarray(sfA) * np.asarray(sfB),
                       rtol=1e-6, atol=1e-6)

    print("KERNEL_OK")
</pallas_src>

<mosaic_0001>
module attributes {stable_mosaic.version = 11 : i64} {
  func.func @kernel(%arg0: i32, %arg1: i32, %arg2: i32, %arg3: i32, %arg4: memref<1x1xf32, #tpu.memory_space<smem>>, %arg5: memref<1x8x128xf32, #tpu.memory_space<vmem>>, %arg6: memref<1x128x128xf32, #tpu.memory_space<vmem>>, %arg7: memref<1x8x128xf32, #tpu.memory_space<vmem>>) attributes {dimension_semantics = [#tpu.dimension_semantics<parallel>, #tpu.dimension_semantics<parallel>, #tpu.dimension_semantics<parallel>, #tpu.dimension_semantics<arbitrary>], iteration_bounds = array<i64: 2, 1, 1, 1>, scalar_prefetch = 0 : i64, scratch_operands = 0 : i64, tpu.core_type = #tpu.core_type<tc>, window_params = [{transform_indices = @transform_0, window_bounds = array<i64: 1, 1>}, {transform_indices = @transform_1, window_bounds = array<i64: 1, 8, 128>}, {transform_indices = @transform_2, window_bounds = array<i64: 1, 128, 128>}, {transform_indices = @transform_3, window_bounds = array<i64: 1, 8, 128>}]} {
    %c0_i32 = arith.constant 0 : i32
    %0 = arith.cmpi eq, %arg3, %c0_i32 : i32
    %1 = arith.extui %0 : i1 to i32
    %c0_i32_0 = arith.constant 0 : i32
    %2 = arith.cmpi ne, %1, %c0_i32_0 : i32
    scf.if %2 {
      %cst_16 = arith.constant 0.000000e+00 : f32
      %33 = vector.broadcast %cst_16 : f32 to vector<8x128xf32>
      %c0_17 = arith.constant 0 : index
      %c0_18 = arith.constant 0 : index
      %c0_19 = arith.constant 0 : index
      %34 = vector.load %arg7[%c0_17, %c0_18, %c0_19] : memref<1x8x128xf32, #tpu.memory_space<vmem>>, vector<1x8x128xf32>
      %35 = vector.shape_cast %34 : vector<1x8x128xf32> to vector<8x128xf32>
      %36 = vector.shape_cast %33 : vector<8x128xf32> to vector<1x8x128xf32>
      tpu.vector_store %arg7[%c0_17, %c0_18, %c0_19], %36 {strides = array<i32>} : memref<1x8x128xf32, #tpu.memory_space<vmem>>, vector<1x8x128xf32>,
    } else {
    }
    %c0 = arith.constant 0 : index
    %c0_1 = arith.constant 0 : index
    %c0_2 = arith.constant 0 : index
    %3 = vector.load %arg5[%c0, %c0_1, %c0_2] : memref<1x8x128xf32, #tpu.memory_space<vmem>>, vector<1x8x128xf32>
    %4 = vector.shape_cast %3 : vector<1x8x128xf32> to vector<8x128xf32>
    %c0_3 = arith.constant 0 : index
    %c0_4 = arith.constant 0 : index
    %c0_5 = arith.constant 0 : index
    %5 = vector.load %arg6[%c0_3, %c0_4, %c0_5] : memref<1x128x128xf32, #tpu.memory_space<vmem>>, vector<1x128x128xf32>
    %6 = vector.shape_cast %5 : vector<1x128x128xf32> to vector<128x128xf32>
    %c128_i32 = arith.constant 128 : i32
    %7 = arith.muli %arg3, %c128_i32 : i32
    %c32_i32 = arith.constant 32 : i32
    %8 = arith.subi %c32_i32, %7 : i32
    %9 = tpu.iota {dimensions = array<i32: 1>} : vector<1x128xi32>
    %10 = tpu.iota {dimensions = array<i32: 0>} : vector<128x1xi32>
    %11 = vector.broadcast %8 : i32 to vector<1x128xi32>
    %12 = arith.cmpi slt, %9, %11 : vector<1x128xi32>
    %cst = arith.constant 0.000000e+00 : f32
    %13 = vector.shape_cast %12 : vector<1x128xi1> to vector<1x128xi1>
    %14 = vector.broadcast %13 : vector<1x128xi1> to vector<8x128xi1>
    %15 = vector.broadcast %cst : f32 to vector<8x128xf32>
    %16 = arith.select %14, %4, %15 : vector<8x128xi1>, vector<8x128xf32>
    %17 = vector.broadcast %8 : i32 to vector<128x1xi32>
    %18 = arith.cmpi slt, %10, %17 : vector<128x1xi32>
    %cst_6 = arith.constant 0.000000e+00 : f32
    %19 = vector.shape_cast %18 : vector<128x1xi1> to vector<128x1xi1>
    %20 = vector.broadcast %19 : vector<128x1xi1> to vector<128x128xi1>
    %21 = vector.broadcast %cst_6 : f32 to vector<128x128xf32>
    %22 = arith.select %20, %6, %21 : vector<128x128xi1>, vector<128x128xf32>
    %c0_7 = arith.constant 0 : index
    %c0_8 = arith.constant 0 : index
    %c0_9 = arith.constant 0 : index
    %23 = vector.load %arg7[%c0_7, %c0_8, %c0_9] : memref<1x8x128xf32, #tpu.memory_space<vmem>>, vector<1x8x128xf32>
    %24 = vector.shape_cast %23 : vector<1x8x128xf32> to vector<8x128xf32>
    %cst_10 = arith.constant dense<0.000000e+00> : vector<8x128xf32>
    %25 = tpu.matmul %16, %22, %cst_10 {dimension_numbers = #tpu.dot_dimension_numbers<[1], [0], [0], [1], [0, 0, 1, 1], [], []>, precision = #tpu.contract_precision<fp32>} : vector<8x128xf32>, vector<128x128xf32>, vector<8x128xf32> -> vector<8x128xf32>
    %26 = arith.addf %24, %25 : vector<8x128xf32>
    %c0_11 = arith.constant 0 : index
    %c0_12 = arith.constant 0 : index
    %c0_13 = arith.constant 0 : index
    %27 = vector.load %arg7[%c0_11, %c0_12, %c0_13] : memref<1x8x128xf32, #tpu.memory_space<vmem>>, vector<1x8x128xf32>
    %28 = vector.shape_cast %27 : vector<1x8x128xf32> to vector<8x128xf32>
    %29 = vector.shape_cast %26 : vector<8x128xf32> to vector<1x8x128xf32>
    tpu.vector_store %arg7[%c0_11, %c0_12, %c0_13], %29 {strides = array<i32>} : memref<1x8x128xf32, #tpu.memory_space<vmem>>, vector<1x8x128xf32>,
    %c0_i32_14 = arith.constant 0 : i32
    %30 = arith.cmpi eq, %arg3, %c0_i32_14 : i32
    %31 = arith.extui %30 : i1 to i32
    %c0_i32_15 = arith.constant 0 : i32
    %32 = arith.cmpi ne, %31, %c0_i32_15 : i32
    scf.if %32 {
      %c0_16 = arith.constant 0 : index
      %c0_17 = arith.constant 0 : index
      %c0_18 = arith.constant 0 : index
      %33 = vector.load %arg7[%c0_16, %c0_17, %c0_18] : memref<1x8x128xf32, #tpu.memory_space<vmem>>, vector<1x8x128xf32>
      %34 = vector.shape_cast %33 : vector<1x8x128xf32> to vector<8x128xf32>
      %c0_19 = arith.constant 0 : index
      %c0_20 = arith.constant 0 : index
      %35 = memref.load %arg4[%c0_19, %c0_20] : memref<1x1xf32, #tpu.memory_space<smem>>
      %36 = vector.broadcast %35 : f32 to vector<8x128xf32>
      %37 = arith.mulf %34, %36 : vector<8x128xf32>
      %c0_21 = arith.constant 0 : index
      %c0_22 = arith.constant 0 : index
      %c0_23 = arith.constant 0 : index
      %38 = vector.load %arg7[%c0_21, %c0_22, %c0_23] : memref<1x8x128xf32, #tpu.memory_space<vmem>>, vector<1x8x128xf32>
      %39 = vector.shape_cast %38 : vector<1x8x128xf32> to vector<8x128xf32>
      %40 = vector.shape_cast %37 : vector<8x128xf32> to vector<1x8x128xf32>
      tpu.vector_store %arg7[%c0_21, %c0_22, %c0_23], %40 {strides = array<i32>} : memref<1x8x128xf32, #tpu.memory_space<vmem>>, vector<1x8x128xf32>,
    } else {
    }
    return
  }
  func.func @transform_0(%arg0: i32, %arg1: i32, %arg2: i32, %arg3: i32) -> (i32, i32) {
    %c0_i32 = arith.constant 0 : i32
    %c0_i32_0 = arith.constant 0 : i32
    %c0_i32_1 = arith.constant 0 : i32
    return %c0_i32, %c0_i32_0 : i32, i32
  }
  func.func @transform_1(%arg0: i32, %arg1: i32, %arg2: i32, %arg3: i32) -> (i32, i32, i32) {
    %c0_i32 = arith.constant 0 : i32
    return %arg0, %arg1, %arg3 : i32, i32, i32
  }
  func.func @transform_2(%arg0: i32, %arg1: i32, %arg2: i32, %arg3: i32) -> (i32, i32, i32) {
    %c0_i32 = arith.constant 0 : i32
    return %arg0, %arg3, %arg2 : i32, i32, i32
  }
  func.func @transform_3(%arg0: i32, %arg1: i32, %arg2: i32, %arg3: i32) -> (i32, i32, i32) {
    %c0_i32 = arith.constant 0 : i32
    return %arg0, %arg1, %arg2 : i32, i32, i32
  }
}

</mosaic_0001>

<bundles_post_ra>
// kernel: tpu_custom_call.1
= control target key start
LH: loop header
LB: loop body
LE: loop exit
PB: predicated region body
PF: predicated region fallthrough
CT: control target
= control target key end

     0   :  { %s1133_s0 = inlined_call_operand.<no memory space> [shape: f32[1,1], index: 0, kind: input, shape index: {}]   ;;  %s1134_s1 = inlined_call_operand.vmem [shape: f32[2,8,32], index: 1, kind: input, shape index: {}]   ;;  %s1135_s2 = inlined_call_operand.vmem [shape: f32[2,32,8], index: 2, kind: input, shape index: {}]   ;;  %s1136_s3 = inlined_call_operand.hbm [shape: f32[2,8,8], index: 3, kind: output, shape index: {}]  }
   0x1   :  { %8 = sst [smem:[#allocation2]] %s1133_s0 }
   0x2   :  { %9 = vsyncpa [#allocation4], 0 }
   0x3   :  { %11 = vsyncpa [#allocation4 + $0x1], 0  ;;  %s1033_s14 = smov 0   ;;  %s1035_s15 = smov 0  }
   0x4   :  { %s1037_s16 = smov 0   ;;  %s1039_s17 = smov 0  }
   0x5   :  { %s1041_s18 = smov 0   ;;  %s1043_s19 = smov 0  }
   0x6 LB: > { %s860_s0 = sadd.s32 4294967295, %s1008_s19   ;;  %s861_s20 = sadd.s32 4294967294, %s1008_s19   ;;  %s1008_s19 = sphi %s1043_s19, %s17_s19   ;;  %s1004_s18 = sphi %s1041_s18, %s1143_s18   ;;  %s1000_s17 = sphi %s1039_s17, %s1142_s17   ;;  %s996_s16 = sphi %s1037_s16, %s1141_s16   ;;  %s992_s15 = sphi %s1035_s15, %s1140_s15   ;;  %s988_s14 = sphi %s1033_s14, %s1139_s14  }
   0x7   : > { %s43_s21 = sadd.s32 1, %s1004_s18  ;;  %s135_s22 = sadd.s32 1, %s996_s16 }
   0x8   : > { %p45_p0 = scmp.ge.s32.totalorder %s43_s21, 2  ;;  %p145_p1 = scmp.ne.s32.totalorder %s996_s16, %s992_s15 }
   0x9   : > { %p146_p2 = scmp.eq.s32.totalorder %s860_s0, 1  ;;  %p151_p3 = scmp.ne.s32.totalorder %s992_s15, %s988_s14 }
   0xa   : > { %s1145_s21 = smov (%p45_p0, %s43_s21), 0  ;;  %p152_p5 = scmp.eq.s32.totalorder %s861_s20, 1 }
   0xb   : > { %p1073_p4 = por %p146_p2, %p145_p1  ;;  %s128_s24 = ssub.s32 %s1004_s18, %s1145_s21 }
   0xc   : > { %p864_p6 = scmp.ge.s32.totalorder %s1008_s19, 1  ;;  %p133_p7 = scmp.eq.s32.totalorder %s128_s24, 0 }
   0xd   : > { %p1080_p8 = por %p152_p5, %p151_p3  ;;  %p206_p9 = scmp.lt.s32.totalorder %s1008_s19, 3 }
   0xe   : > { %s1086_s26 = scalar_select %p133_p7, %s996_s16, %s135_s22  }
   0xf   : > { %p207_p10 = pnand %p864_p6, %p206_p9 }
  0x10   : > { %p249_p11 = scmp.lt.s32.totalorder (!%p207_p10), %s1000_s17, 1  ;;  %s246_s9 = sand.u32 (!%p207_p10), 1, %s992_s15  }
  0x11   : > { %210 = sbr.rel (%p207_p10) target bundleno = 185 (0xb9), region = 32  ;;  %s736_s10 = sld [smem:[#allocation2]] (!%p207_p10) }
  0x12   : > { %s865_s11 = sshll.u32 (!%p207_p10), %s246_s9, 3  ;;  %s870_s12 = sshll.u32 (!%p207_p10), %s1000_s17, 3 }
  0x13   : > { %s753_s20 = scalar_lea.hbm (!%p207_p10), %s1136_s3, %s870_s12  ;;  %s248_s22 = scalar_lea.vmem (!%p207_p10), [#allocation3], %s865_s11 }
  0x14   : > { %s755_s24 = sshll.u32 (!%p207_p10), %s248_s22, 4  ;;  %s756_s24 = int_to_ptr.vmem [resolvable:$true] %s755_s24 }
  0x16   : > { %v300_v0 = vlaneseq  ;;  %s250_s27 = scalar_select %p249_p11, %s1000_s17, 1 }
  0x17   : > { %v737_v44 = vstv %s736_s10 }
  0x18   : > { %v301_v1 = vand.u32 127, %v300_v0  ;;  %s873_s28 = sshll.u32 %s250_s27, 5  ;;  %s866_s29 = sshll.u32 %s250_s27, 3 }
  0x19   : > { %s272_s5 = scalar_lea.vmem %s1135_s2, %s873_s28  ;;  %s258_s8 = scalar_lea.vmem %s1134_s1, %s866_s29 }
  0x1a   : > { %vm320_vm0 = vcmp.lt.s32.totalorder %v301_v1, 32  ;;  %v285_v2 = vld [vmem:[%s272_s5 + $0x18] sm:$0xff]  ;;  %v284_v3 = vld [vmem:[%s272_s5 + $0x10] sm:$0xff]  ;;  %v283_v4 = vld [vmem:[%s272_s5 + $0x8] sm:$0xff]  ;;  %s757_s27 = sshll.u32 %s753_s20, 4  ;;  %s741_s28 = scalar_lea.sflag [#allocation4], %s246_s9  ;;  %s758_s27 = int_to_ptr.hbm [resolvable:$true] %s757_s27 }
  0x1b   : > { %v413_v5 = vand.u32 4294901760, %v285_v2  ;;  %v415_v6 = vand.u32 4294901760, %v284_v3  ;;  %v417_v7 = vand.u32 4294901760, %v283_v4  ;;  %v282_v8 = vld [vmem:[%s272_s5] sm:$0xff]  ;;  %s944_s29 = sshra.s32 %s758_s27, 4  ;;  %s950_s5 = scalar_lea.hbm %s1136_s3, 16  ;;  %s945_s29 = int_to_ptr.hbm [resolvable:$true] %s944_s29 }
  0x1c   : > { %v281_v9 = vld [vmem:[%s258_s8] sm:$0xff]  ;;  %v419_v10 = vand.u32 4294901760, %v282_v8  ;;  %s946_s17 = scalar_lea.hbm %s945_s29, 8  ;;  %p951_p1 = scmp.lt.s32.totalorder %s945_s29, %s1136_s3 }
  0x1d   : > { %v323_v11 = vsel %vm320_vm0, %v281_v9, 0.0  ;;  %v503_v12 = vsub.f32 %v285_v2, %v413_v5  ;;  %414 = vmatpush.msra.mxu0 %v413_v5  ;;  %v509_v13 = vsub.f32 %v284_v3, %v415_v6  ;;  %610 = vmatpush.msra.mxu3 %v413_v5  ;;  %v515_v14 = vsub.f32 %v283_v4, %v417_v7  ;;  %p947_p12 = scmp.ne.s32.totalorder %s945_s29, %s946_s17  ;;  %p952_p2 = scmp.lt.s32.totalorder %s950_s5, %s946_s17 }
  0x1e   : > { %v421_v15 = vand.u32 4294901760, %v323_v11  ;;  %v521_v16 = vsub.f32 %v282_v8, %v419_v10 }
  0x1f   : > { %569 = vmatpush.msra.mxu2 %v503_v12  ;;  %416 = vmatpush.msra.mxu0 %v415_v6  ;;  %v504_v17 = vand.u32 4294901760, %v503_v12  ;;  %v510_v18 = vand.u32 4294901760, %v509_v13  ;;  %v516_v20 = vand.u32 4294901760, %v515_v14  ;;  %p948_p13 = pnand %p947_p12, %p1073_p4  ;;  %p953_p3 = por %p952_p2, %p951_p1 }
  0x20   : > { %v422_v19 = vsub.f32 %v323_v11, %v421_v15  ;;  %612 = vmatpush.msra.mxu3 %v415_v6  ;;  %v522_v21 = vand.u32 4294901760, %v521_v16 }
  0x21   : > { %572 = vmatpush.msra.mxu2 %v509_v13  ;;  %v505_v22 = vsub.f32 %v503_v12, %v504_v17  ;;  %418 = vmatpush.msra.mxu0 %v417_v7  ;;  %v511_v23 = vsub.f32 %v509_v13, %v510_v18  ;;  %v517_v24 = vsub.f32 %v515_v14, %v516_v20  ;;  %p949_p0 = pneg %p948_p13 }
  0x22   : > { %v423_v25 = vand.u32 4294901760, %v422_v19  ;;  %614 = vmatpush.msra.mxu3 %v417_v7  ;;  %v523_v29 = vsub.f32 %v521_v16, %v522_v21 }
  0x23   : > { %v506_v26 = vand.u32 4294901760, %v505_v22  ;;  %575 = vmatpush.msra.mxu2 %v515_v14  ;;  %v512_v27 = vand.u32 4294901760, %v511_v23  ;;  %420 = vmatpush.msra.mxu0 %v419_v10  ;;  %v518_v30 = vand.u32 4294901760, %v517_v24  ;;  %p954_p5 = pnand %p953_p3, %p949_p0 }
  0x24   : > { %v424_v28 = vsub.f32 %v422_v19, %v423_v25  ;;  %616 = vmatpush.msra.mxu3 %v419_v10  ;;  %v524_v32 = vand.u32 4294901760, %v523_v29 }
  0x25   : > { %675 = vmatpush.msrb.mxu0 %v504_v17  ;;  %507 = vmatpush.msra.mxu1 %v506_v26 }
  0x26   : > { %578 = vmatpush.msra.mxu2 %v521_v16  ;;  %v425_v31 = vand.u32 4294901760, %v424_v28  ;;  %620 = vmatmul.f32.vlgmr.msra.gmra.mxu3 %v423_v25 }
  0x27   : > { %581 = vmatmul.f32.vlgmr.msra.gmra.mxu2 %v422_v19  ;;  %513 = vmatpush.msra.mxu1 %v512_v27 }
  0x28   : > { %426 = vmatmul.f32.vlgmr.msra.gmra.mxu0 %v425_v31 }
  0x29   : > { %679 = vmatpush.msrb.mxu0 %v510_v18  ;;  %519 = vmatpush.msra.mxu1 %v518_v30 }
  0x2b   : > { %683 = vmatpush.msrb.mxu0 %v516_v20  ;;  %525 = vmatpush.msra.mxu1 %v524_v32 }
  0x2c   : > { %527 = vmatmul.f32.vlgmr.msra.gmra.mxu1 %v421_v15 }
  0x2d   : > { %687 = vmatpush.msrb.mxu0 %v522_v21  ;;  %718 = vmatpush.msrb.mxu1 %v413_v5 }
  0x2f   : > { %720 = vmatpush.msrb.mxu1 %v415_v6 }
  0x30   : > { %689 = vmatmul.f32.vlgmr.msrb.gmra.mxu0 %v421_v15 }
  0x31   : > { %722 = vmatpush.msrb.mxu1 %v417_v7 }
  0x33   : > { %724 = vmatpush.msrb.mxu1 %v419_v10 }
  0x34   : > { %726 = vmatmul.f32.vlgmr.msrb.gmra.mxu1 %v421_v15 }
  0xa5   : > { %v427_v33 = vpop.f32.mrf.mxu0 }
  0xa9   : > { %v528_v34 = vpop.f32.mrf.mxu1  ;;  %v621_v37 = vpop.f32.mrf.mxu3 }
  0xaa   : > { %v582_v35 = vpop.f32.mrf.mxu2  ;;  %v529_v36 = vadd.f32 %v528_v34, %v427_v33 }
  0xac   : > { %v583_v38 = vadd.f32 %v582_v35, %v529_v36 }
  0xad   : > { %v690_v39 = vpop.f32.mrf.mxu0 }
  0xae   : > { %v622_v40 = vadd.f32 %v621_v37, %v583_v38 }
  0xb0   : > { %v691_v41 = vadd.f32 %v690_v39, %v622_v40 }
  0xb1   : > { %v727_v42 = vpop.f32.mrf.mxu1 }
  0xb2   : > { %v728_v43 = vadd.f32 %v727_v42, %v691_v41 }
  0xb4   : > { %v738_v45 = vmul.f32 %v737_v44, %v728_v43 }
  0xb6   : > { %739 = vst [vmem:[%s248_s22] sm:$0xff] %v738_v45 }
  0xb7   : > { %957 = shalt.err (!%p954_p5)
}
  0xb8   : > { %874 = dma.vmem_to_hbm [thread:$0]  (%p1073_p4), %s756_s24, 128, %s758_s27, %s741_s28  }
  0xb9 PF: > { %p880_p6 = scmp.ge.s32.totalorder %s1008_s19, 2  ;;  %s769_s8 = sand.u32 1, %s988_s14  }
  0xba   : > { %s770_s9 = scalar_lea.sflag [#allocation4], %s769_s8 }
  0xbb   : > { %p877_p7 = pnand %p880_p6, %p1080_p8 }
  0xbd   : > { %p878_p9 = pneg %p877_p7 }
  0xbf   : > { %983 = dma.done.wait (%p878_p9), %s770_s9, 128  }
  0xc0   : > { %985 = vsyncadd (%p878_p9), %s770_s9, 4294967168  ;;  %s17_s19 = sadd.s32 1, %s1008_s19   ;;  %s1139_s14 = smov %s992_s15 }
  0xc1   : > { %p14_p10 = scmp.ge.s32.totalorder %s17_s19, 4   ;;  %s1140_s15 = smov %s996_s16 }
  0xc2   : > { %s1141_s16 = smov %s1086_s26  ;;  %s1142_s17 = smov %s1004_s18 }
  0xc3   : > { %s1143_s18 = smov %s1145_s21  ;;  %16 = sbr.rel (!%p14_p10) target bundleno = 6 (0x6), region = 78 }
  0xc8   :  { %776 = vsyncpa [#allocation4], 1 }
  0xc9   :  { %778 = vsyncpa [#allocation4 + $0x1], 1 }

</bundles_post_ra>
